<compile_context>
chip_gen: v5e
topology: v5e:2x2
jax: 0.10.0
libtpu: 0.0.40
codegen_flags: <defaults>
</compile_context>

<pallas_src>
import jax
import jax.numpy as jnp
from jax.experimental import pallas as pl
from jax.experimental.pallas import tpu as pltpu

# Points (lanes) per grid step.  See VMEM budget in the header comment.
TILE_LANES = 32768

_CPARAMS = pltpu.CompilerParams(dimension_semantics=("parallel",))


def _round_up(n, m):
    return ((n + m - 1) // m) * m


def _lane_tile(n):
    """Lane (point) tile per grid step.

    - n <= 128 : one full-extent block (block dims == array dims, always legal).
    - otherwise: a multiple of 128, capped at TILE_LANES, and split >= 2 ways
      so the grid has at least two steps (both v7x TensorCores get work under
      dimension_semantics=("parallel",)); Pallas masks the partial tail block.
    """
    if n <= 128:
        return n
    if n <= 256:
        return 128
    return min(TILE_LANES, _round_up(pl.cdiv(n, 2), 128))


# ---------------------------------------------------------------------------
# Kernels (channels-first: refs are (C, tn); writes are full-lane sublane
# slices of o_ref -- no concatenate temps, no masked partial-lane stores)
# ---------------------------------------------------------------------------
def _cat_cartesian_kernel(x_ref, d_ref, o_ref):
    # torch.cat((x, dirs[:, :2], dirs[:, 2:]), dim=1)  (== cat(x, dirs))
    f = x_ref.shape[0]
    o_ref[0:f, :] = x_ref[...]
    o_ref[f:f + 4, :] = d_ref[...]


def _cat_cartesian_diff_kernel(x_ref, d_ref, o_ref):
    # torch.cat((x, dirs[:, :2] - dirs[:, 2:]), dim=1)
    f = x_ref.shape[0]
    o_ref[0:f, :] = x_ref[...]
    o_ref[f:f + 2, :] = d_ref[0:2, :] - d_ref[2:4, :]


def _sph_to_cart_kernel(s_ref, o_ref):
    # rows of s_ref: [azimuth; polar]   (2, tn)
    # vec[0] = sin(pol)*cos(az); vec[1] = sin(pol)*sin(az); vec[2] = cos(pol)
    # One sin and one cos over the full (2, tn) block: both rows share the
    # same vregs (sublanes 0-1), so this halves the EUP pushes vs. per-row.
    s_all = jnp.sin(s_ref[...])          # rows: [sin(az); sin(pol)]
    c_all = jnp.cos(s_ref[...])          # rows: [cos(az); cos(pol)]
    sin_pol = s_all[1:2, :]
    o_ref[0:1, :] = sin_pol * c_all[0:1, :]
    o_ref[1:2, :] = sin_pol * s_all[0:1, :]
    o_ref[2:3, :] = c_all[1:2, :]


def _cart_to_sph_kernel(c_ref, o_ref):
    # rows of c_ref: [x; y; z]   (3, tn)
    # sph[0] = atan2(y, x) ; sph[1] = acos(z)
    x = c_ref[0:1, :]
    y = c_ref[1:2, :]
    z = c_ref[2:3, :]
    o_ref[0:1, :] = jnp.arctan2(y, x)
    # acos(z) via atan2: exact for |z| <= 1 (unit direction vectors).  Note:
    # for |z| > 1 this clamps to 0 / pi where torch.acos would return NaN.
    o_ref[1:2, :] = jnp.arctan2(jnp.sqrt(jnp.maximum(1.0 - z * z, 0.0)), z)


# ---------------------------------------------------------------------------
# pallas_call launcher for channels-first (C, N) arrays
# ---------------------------------------------------------------------------
def _launch_cf(kernel, inputs, out_channels):
    n = inputs[0].shape[1]
    dtype = inputs[0].dtype
    tn = _lane_tile(n)
    return pl.pallas_call(
        kernel,
        out_shape=jax.ShapeDtypeStruct((out_channels, n), dtype),
        grid=(pl.cdiv(n, tn),),
        in_specs=[pl.BlockSpec((a.shape[0], tn), lambda i: (0, i)) for a in inputs],
        out_specs=pl.BlockSpec((out_channels, tn), lambda i: (0, i)),
        compiler_params=_CPARAMS,
    )(*inputs)


# ---------------------------------------------------------------------------
# Public wrappers.  channels_first=True is the lane-dense fast path
# ((C, N) arrays); channels_first=False matches the PyTorch (N, C) convention
# and only adds wrapper-side transposes (layout plumbing).
# ---------------------------------------------------------------------------
def pointnet_forward(x, **kwargs):
    """PointNetBase.forward: identity.  No kernel launch."""
    return x


def cat_dirs(x, dirs, mode="none", channels_first=False):
    """PointNetBase.cat_dirs."""
    if mode == "none":
        return x
    if mode == "cartesian":
        kernel, extra = _cat_cartesian_kernel, 4
    elif mode == "cartesian_diff":
        kernel, extra = _cat_cartesian_diff_kernel, 2
    elif mode == "spherical":
        # TODO(synk): reference 'spherical' mode calls _cartesian_to_spherical
        # on 2-column slices dirs[:, :2] / dirs[:, 2:] but indexes
        # cartesian[:, 2], which raises IndexError in PyTorch; semantics
        # undefined, not reproduced.
        raise NotImplementedError("spherical cat_dirs mode is broken in the reference")
    else:
        raise Exception("invalid cat_in_features")

    if not channels_first:
        # PyTorch (N, C) layout: transpose to the lane-dense (C, N) layout,
        # run the kernel, transpose back.  Prefer channels_first=True.
        return cat_dirs(x.T, dirs.T, mode, channels_first=True).T

    f = x.shape[0]
    return _launch_cf(kernel, (x, dirs), f + extra)


def spherical_to_cartesian(sph, channels_first=False):
    """PointNetBase._spherical_to_cartesian: angles -> unit vectors."""
    if not channels_first:
        return spherical_to_cartesian(sph.T, channels_first=True).T
    return _launch_cf(_sph_to_cart_kernel, (sph,), 3)


def cartesian_to_spherical(cart, channels_first=False):
    """PointNetBase._cartesian_to_spherical: unit vectors -> angles."""
    if not channels_first:
        return cartesian_to_spherical(cart.T, channels_first=True).T
    return _launch_cf(_cart_to_sph_kernel, (cart,), 2)


# ---------------------------------------------------------------------------
# Demo / self-check
# ---------------------------------------------------------------------------
def _make_inputs(key, N, F):
    kx, kd, ks = jax.random.split(key, 3)
    x = jax.random.normal(kx, (N, F), dtype=jnp.float32)
    raw = jax.random.normal(kd, (N, 4), dtype=jnp.float32)
    d0 = raw[:, :2] / jnp.linalg.norm(raw[:, :2], axis=1, keepdims=True)
    d1 = raw[:, 2:] / jnp.linalg.norm(raw[:, 2:], axis=1, keepdims=True)
    dirs = jnp.concatenate([d0, d1], axis=1)
    cart_raw = jax.random.normal(ks, (N, 3), dtype=jnp.float32)
    cart = cart_raw / jnp.linalg.norm(cart_raw, axis=1, keepdims=True)
    return x, dirs, cart


def _check(N, F, key):
    x, dirs, cart = _make_inputs(key, N, F)
    x_cf, dirs_cf, cart_cf = x.T, dirs.T, cart.T

    # 1) forward == identity (no kernel launch)
    y = jax.block_until_ready(pointnet_forward(x))
    assert jnp.array_equal(y, x), "forward identity mismatch"

    # 2) channels-first (lane-dense) fast path
    out = jax.block_until_ready(cat_dirs(x_cf, dirs_cf, "cartesian", channels_first=True))
    ref = jnp.concatenate([x_cf, dirs_cf[:2], dirs_cf[2:]], axis=0)
    assert out.shape == (F + 4, N) and jnp.allclose(out, ref), "cf cartesian mismatch"

    out = jax.block_until_ready(cat_dirs(x_cf, dirs_cf, "cartesian_diff", channels_first=True))
    ref = jnp.concatenate([x_cf, dirs_cf[:2] - dirs_cf[2:]], axis=0)
    assert out.shape == (F + 2, N) and jnp.allclose(out, ref), "cf cartesian_diff mismatch"

    out = cat_dirs(x_cf, dirs_cf, "none", channels_first=True)
    assert jnp.array_equal(out, x_cf), "cf none-mode mismatch"

    sph_cf = jax.block_until_ready(cartesian_to_spherical(cart_cf, channels_first=True))
    ref_sph_cf = jnp.stack(
        [jnp.arctan2(cart_cf[1], cart_cf[0]), jnp.arccos(cart_cf[2])], axis=0)
    assert jnp.allclose(sph_cf, ref_sph_cf, atol=1e-5), "cf cartesian_to_spherical mismatch"

    back_cf = jax.block_until_ready(spherical_to_cartesian(sph_cf, channels_first=True))
    assert jnp.allclose(back_cf, cart_cf, atol=1e-4), "cf spherical_to_cartesian mismatch"

    # 3) PyTorch (N, C) convenience path (wrapper-side transposes)
    out = jax.block_until_ready(cat_dirs(x, dirs, "cartesian"))
    ref = jnp.concatenate([x, dirs[:, :2], dirs[:, 2:]], axis=1)
    assert out.shape == (N, F + 4) and jnp.allclose(out, ref), "cartesian mismatch"

    out = jax.block_until_ready(cat_dirs(x, dirs, "cartesian_diff"))
    ref = jnp.concatenate([x, dirs[:, :2] - dirs[:, 2:]], axis=1)
    assert jnp.allclose(out, ref), "cartesian_diff mismatch"

    sph = jax.block_until_ready(cartesian_to_spherical(cart))
    ref_sph = jnp.stack(
        [jnp.arctan2(cart[:, 1], cart[:, 0]), jnp.arccos(cart[:, 2])], axis=1)
    assert jnp.allclose(sph, ref_sph, atol=1e-5), "cartesian_to_spherical mismatch"

    back = jax.block_until_ready(spherical_to_cartesian(sph))
    assert jnp.allclose(back, cart, atol=1e-4), "spherical_to_cartesian mismatch"


if __name__ == "__main__":
    key = jax.random.PRNGKey(0)
    k_small, k_multi = jax.random.split(key, 2)

    # Small shape: single full-extent block (block dims == array dims).
    _check(N=16, F=8, key=k_small)
    # Multi-block grid with a partial tail block (2000 pts, 1024-lane tiles,
    # 2 grid steps -> both v7x TensorCores active).
    _check(N=2000, F=8, key=k_multi)

    print("KERNEL_OK")
</pallas_src>

<mosaic_0001>
module attributes {stable_mosaic.version = 11 : i64} {
  func.func @_cat_cartesian_kernel(%arg0: i32, %arg1: memref<8x16xf32, #tpu.memory_space<vmem>>, %arg2: memref<4x16xf32, #tpu.memory_space<vmem>>, %arg3: memref<12x16xf32, #tpu.memory_space<vmem>>) attributes {dimension_semantics = [#tpu.dimension_semantics<parallel>], iteration_bounds = array<i64: 1>, scalar_prefetch = 0 : i64, scratch_operands = 0 : i64, tpu.core_type = #tpu.core_type<tc>, window_params = [{transform_indices = @transform_0, window_bounds = array<i64: 8, 16>}, {transform_indices = @transform_1, window_bounds = array<i64: 4, 16>}, {transform_indices = @transform_2, window_bounds = array<i64: 12, 16>}]} {
    %c0 = arith.constant 0 : index
    %c0_0 = arith.constant 0 : index
    %0 = vector.load %arg1[%c0, %c0_0] : memref<8x16xf32, #tpu.memory_space<vmem>>, vector<8x16xf32>
    %c0_1 = arith.constant 0 : index
    %c0_2 = arith.constant 0 : index
    %1 = vector.load %arg3[%c0_1, %c0_2] : memref<12x16xf32, #tpu.memory_space<vmem>>, vector<8x16xf32>
    tpu.vector_store %arg3[%c0_1, %c0_2], %0 {strides = array<i32>} : memref<12x16xf32, #tpu.memory_space<vmem>>, vector<8x16xf32>,
    %c0_3 = arith.constant 0 : index
    %c0_4 = arith.constant 0 : index
    %2 = vector.load %arg2[%c0_3, %c0_4] : memref<4x16xf32, #tpu.memory_space<vmem>>, vector<4x16xf32>
    %c8 = arith.constant 8 : index
    %c0_5 = arith.constant 0 : index
    %3 = vector.load %arg3[%c8, %c0_5] : memref<12x16xf32, #tpu.memory_space<vmem>>, vector<4x16xf32>
    tpu.vector_store %arg3[%c8, %c0_5], %2 {strides = array<i32>} : memref<12x16xf32, #tpu.memory_space<vmem>>, vector<4x16xf32>,
    return
  }
  func.func @transform_0(%arg0: i32) -> (i32, i32) {
    %c0_i32 = arith.constant 0 : i32
    %c0_i32_0 = arith.constant 0 : i32
    return %c0_i32, %arg0 : i32, i32
  }
  func.func @transform_1(%arg0: i32) -> (i32, i32) {
    %c0_i32 = arith.constant 0 : i32
    %c0_i32_0 = arith.constant 0 : i32
    return %c0_i32, %arg0 : i32, i32
  }
  func.func @transform_2(%arg0: i32) -> (i32, i32) {
    %c0_i32 = arith.constant 0 : i32
    %c0_i32_0 = arith.constant 0 : i32
    return %c0_i32, %arg0 : i32, i32
  }
}

</mosaic_0001>

<bundles_post_ra>
// kernel: tpu_custom_call.1
= control target key start
LH: loop header
LB: loop body
LE: loop exit
PB: predicated region body
PF: predicated region fallthrough
CT: control target
= control target key end

     0   :  { %7 = vsyncpa [#allocation3], 0  ;;  %s178_s0 = inlined_call_operand.hbm [shape: f32[8,16], index: 0, kind: input, shape index: {}]   ;;  %s179_s1 = inlined_call_operand.hbm [shape: f32[4,16], index: 1, kind: input, shape index: {}]   ;;  %s180_s2 = inlined_call_operand.hbm [shape: f32[12,16], index: 2, kind: output, shape index: {}]  }
   0x1   :  { %8 = vsyncpa [#allocation6], 0 }
   0x2   :  { %9 = vsyncpa [#allocation4], 0  ;;  %s15_s11 = sshll.u32 %s178_s0, 4  ;;  %s149_s12 = smov [#allocation2]   ;;  %s16_s11 = int_to_ptr.hbm [resolvable:$true] %s15_s11 }
   0x3   :  { %s17_s13 = sshll.u32 %s149_s12, 4  ;;  %s26_s16 = sshll.u32 %s179_s1, 4  ;;  %s18_s13 = int_to_ptr.vmem [resolvable:$true] %s17_s13  ;;  %s27_s16 = int_to_ptr.hbm [resolvable:$true] %s26_s16 }
   0x4   :  { %20 = dma.hbm_to_vmem [thread:$0]  %s16_s11, 128, %s18_s13, [#allocation3]  }
   0x5   :  { %s150_s17 = smov [#allocation5]  }
   0x6   :  { %s28_s18 = sshll.u32 %s150_s17, 4  ;;  %s29_s18 = int_to_ptr.vmem [resolvable:$true] %s28_s18 }
   0x7   :  { %31 = dma.hbm_to_vmem [thread:$0]  %s27_s16, 64, %s29_s18, [#allocation6]  }
   0x8   :  { %143 = dma.done.wait [#allocation3], 128  }
   0x9   :  { %144 = vsyncadd [#allocation3], 4294967168 }
   0xa   :  { %145 = dma.done.wait [#allocation6], 64  }
   0xb   :  { %146 = vsyncadd [#allocation6], 4294967232  ;;  %s151_s19 = smov [#allocation7]   ;;  %s52_s22 = sshll.u32 %s180_s2, 4  ;;  %vm41_vm0 = vcmask 130048   ;;  %vm44_vm1 = vcmask 125952   ;;  %s53_s22 = int_to_ptr.hbm [resolvable:$true] %s52_s22 }
   0xc   :  { %s50_s0 = sshll.u32 %s151_s19, 4  ;;  %v40_v0 = vld [vmem:[#allocation2] sm:$0xff]  ;;  %v43_v1 = vld [vmem:[#allocation5] sm:$0xf]  ;;  %s152_s1 = smov 128   ;;  %s51_s0 = int_to_ptr.vmem [resolvable:$true] %s50_s0 }
   0xd   :  { %42 = vst.msk [vmem:[#allocation7] sm:$0xff] %vm41_vm0, %v40_v0  ;;  %s153_s23 = smov 8  }
   0xe   :  { %45 = vst.msk [vmem:[#allocation7 + $0x8] sm:$0xf] %vm44_vm1, %v43_v1 }
   0xf   :  { %58 = dma.vmem_to_hbm [thread:$0]  %s51_s0, 256, %s53_s22, [#allocation4], %s152_s1, %s152_s1, %s153_s23  }
  0x10   :  { %147 = dma.done.wait [#allocation4], 256  }
  0x11   :  { %148 = vsyncadd [#allocation4], 4294967040 }
  0x12   :  { %63 = vsyncpa [#allocation3], 1 }
  0x13   :  { %64 = vsyncpa [#allocation6], 1 }
  0x14   :  { %65 = vsyncpa [#allocation4], 1 }

</bundles_post_ra>
